<compile_context>
chip_gen: v6e
topology: v6e:2x2x1
jax: 0.10.0
libtpu: 0.0.40
codegen_flags: <defaults>
</compile_context>

<pallas_src>
import jax
import jax.numpy as jnp
from jax.experimental import pallas as pl
from jax.experimental.pallas import tpu as pltpu


def _idwt_haar_kernel(x_ref, o_ref):
    """Fused Haar IDWT for one row tile.

    x_ref: (1, 4, RT, W)  subbands [LL, LH, HL, HH]; row r = (channel, i) pair.
    o_ref: (1, RT, 4*W)   lanes [0, 2W) = output image row 2i,
                          lanes [2W, 4W) = output image row 2i+1.
    """
    w = x_ref.shape[3]
    cdt = jnp.bfloat16 if x_ref.dtype == jnp.bfloat16 else jnp.float32

    ll = x_ref[0, 0].astype(cdt)
    lh = x_ref[0, 1].astype(cdt)
    hl = x_ref[0, 2].astype(cdt)
    hh = x_ref[0, 3].astype(cdt)

    # Two-stage butterfly with the 0.5 folded in (VPU).
    half = jnp.asarray(0.5, cdt)
    a0 = (ll + lh) * half      # feeds even output rows (a = 0)
    a1 = (ll - lh) * half      # feeds odd  output rows (a = 1)
    b0 = (hl + hh) * half
    b1 = (hl - hh) * half

    # Column interleave on the (otherwise idle) MXU:
    #   out_row_a[:, 2j + p] = A_a[:, j] + (-1)^p * B_a[:, j]
    # m_a/m_b are 0/+-1 and block-diagonal, so process <=128-wide column
    # chunks to keep the redundant MXU work bounded independent of W.
    step = min(w, 128)
    for c0 in range(0, w, step):
        wc = min(step, w - c0)
        jj = 2 * jax.lax.broadcasted_iota(jnp.int32, (wc, 2 * wc), 0)
        kk = jax.lax.broadcasted_iota(jnp.int32, (wc, 2 * wc), 1)
        e_hit = (kk == jj).astype(cdt)       # routes to even columns 2j
        o_hit = (kk == jj + 1).astype(cdt)   # routes to odd  columns 2j+1
        m_a = e_hit + o_hit                  # +A at 2j, +A at 2j+1
        m_b = e_hit - o_hit                  # +B at 2j, -B at 2j+1

        csl = slice(c0, c0 + wc)
        even = (jnp.dot(a0[:, csl], m_a, preferred_element_type=jnp.float32) +
                jnp.dot(b0[:, csl], m_b, preferred_element_type=jnp.float32))
        odd = (jnp.dot(a1[:, csl], m_a, preferred_element_type=jnp.float32) +
               jnp.dot(b1[:, csl], m_b, preferred_element_type=jnp.float32))

        o_ref[0, :, 2 * c0:2 * (c0 + wc)] = even.astype(o_ref.dtype)
        o_ref[0, :, 2 * w + 2 * c0:2 * w + 2 * (c0 + wc)] = odd.astype(o_ref.dtype)


def _pick_row_tile(rows, w, itemsize, vmem_budget_bytes, min_row_steps=4):
    """Largest row tile that divides `rows`, is a multiple of 8, keeps the
    double-buffered (input + output) working set under `vmem_budget_bytes`,
    and leaves >= `min_row_steps` grid steps when the problem is big enough."""
    if rows % 8 != 0:
        return rows                      # full-extent block is always legal
    # Per grid step: input 4*rt*w + output 4*rt*w elements, double buffered.
    step_bytes_per_row = 16 * w * itemsize
    cap = max(8, (vmem_budget_bytes // step_bytes_per_row) // 8 * 8)
    if rows >= 8 * min_row_steps:
        cap = min(cap, max(8, (rows // min_row_steps) // 8 * 8))
    rt = min(rows, cap)
    while rows % rt:
        rt -= 8
    return rt


def wave_block_forward(x, *, vmem_budget_bytes=4 * 1024 * 1024):
    """Pallas implementation of WaveBlock.forward == IDWT_2D('haar')(x)."""
    B, C, H, W = x.shape
    assert C % 4 == 0, "IDWT_2D requires channels divisible by 4"
    c4 = C // 4
    rows = c4 * H

    # Free (contiguous) reshape: split subbands, merge (c4, H) into one axis.
    xr = x.reshape(B, 4, rows, W)

    rt = _pick_row_tile(rows, W, x.dtype.itemsize, vmem_budget_bytes)
    grid = (B, rows // rt)

    out = pl.pallas_call(
        _idwt_haar_kernel,
        out_shape=jax.ShapeDtypeStruct((B, rows, 4 * W), x.dtype),
        grid=grid,
        in_specs=[pl.BlockSpec((1, 4, rt, W), lambda b, r: (b, 0, r, 0))],
        out_specs=pl.BlockSpec((1, rt, 4 * W), lambda b, r: (b, r, 0)),
        compiler_params=pltpu.CompilerParams(
            dimension_semantics=("parallel", "parallel"),
            vmem_limit_bytes=32 * 1024 * 1024,
        ),
    )(xr)

    # Free reshape: (B, c4*H, 4W) row-major == (B, c4, 2H, 2W) row-major,
    # because row r = c*H + i and lane a*2W + 2j + p  ->  (c, 2i+a, 2j+p).
    return out.reshape(B, c4, 2 * H, 2 * W)


def idwt_haar_reference(x):
    """Pure-JAX reference mirroring torch conv_transpose2d(haar, stride=2, groups)."""
    B, C, H, W = x.shape
    c4 = C // 4
    ll, lh, hl, hh = (x[:, 0:c4], x[:, c4:2 * c4],
                      x[:, 2 * c4:3 * c4], x[:, 3 * c4:4 * c4])
    out = jnp.zeros((B, c4, 2 * H, 2 * W), jnp.float32)
    llf, lhf, hlf, hhf = (a.astype(jnp.float32) for a in (ll, lh, hl, hh))
    out = out.at[:, :, 0::2, 0::2].set(0.5 * (llf + lhf + hlf + hhf))
    out = out.at[:, :, 0::2, 1::2].set(0.5 * (llf + lhf - hlf - hhf))
    out = out.at[:, :, 1::2, 0::2].set(0.5 * (llf - lhf + hlf - hhf))
    out = out.at[:, :, 1::2, 1::2].set(0.5 * (llf - lhf - hlf + hhf))
    return out.astype(x.dtype)


if __name__ == "__main__":
    key = jax.random.PRNGKey(0)
    k_x, k_x2, k_w, k_b = jax.random.split(key, 4)

    # Primary shape: B=2, C=8 (=> C//4 = 2 output channels), 16x16 spatial.
    B, C, H, W = 2, 8, 16, 16
    x = jax.random.normal(k_x, (B, C, H, W), dtype=jnp.float32)

    # WaveBlock.linear = Conv2d(C, C//2, 3, padding=1) exists in __init__ but is
    # never used in forward(); keep a deterministic init for __init__ fidelity.
    linear_w = jax.random.normal(k_w, (C // 2, C, 3, 3), jnp.float32) * 0.02
    linear_b = jax.random.normal(k_b, (C // 2,), jnp.float32) * 0.02
    del linear_w, linear_b  # unused in forward

    y = wave_block_forward(x)
    jax.block_until_ready(y)
    y_ref = idwt_haar_reference(x)
    assert y.shape == (B, C // 4, 2 * H, 2 * W), y.shape
    err = float(jnp.max(jnp.abs(y.astype(jnp.float32) - y_ref.astype(jnp.float32))))
    # 1e-4 abs tolerance covers MXU multi-pass f32 accumulation on all TPU gens.
    assert err <= 1e-4, f"max abs err {err}"

    # Secondary shape: rows (= C//4 * H) not a multiple of 8 -> full-block path.
    x2 = jax.random.normal(k_x2, (1, 4, 6, 16), dtype=jnp.float32)
    y2 = wave_block_forward(x2)
    jax.block_until_ready(y2)
    err2 = float(jnp.max(jnp.abs(y2 - idwt_haar_reference(x2))))
    assert y2.shape == (1, 1, 12, 32), y2.shape
    assert err2 <= 1e-4, f"max abs err {err2}"

    print("KERNEL_OK")
</pallas_src>

<mosaic_0001>
module attributes {stable_mosaic.version = 11 : i64} {
  func.func @_idwt_haar_kernel(%arg0: i32, %arg1: i32, %arg2: memref<1x4x8x16xf32, #tpu.memory_space<vmem>>, %arg3: memref<1x8x64xf32, #tpu.memory_space<vmem>>) attributes {dimension_semantics = [#tpu.dimension_semantics<parallel>, #tpu.dimension_semantics<parallel>], iteration_bounds = array<i64: 2, 4>, scalar_prefetch = 0 : i64, scratch_operands = 0 : i64, tpu.core_type = #tpu.core_type<tc>, window_params = [{transform_indices = @transform_0, window_bounds = array<i64: 1, 4, 8, 16>}, {transform_indices = @transform_1, window_bounds = array<i64: 1, 8, 64>}]} {
    %c0 = arith.constant 0 : index
    %c0_0 = arith.constant 0 : index
    %c0_1 = arith.constant 0 : index
    %c0_2 = arith.constant 0 : index
    %0 = vector.load %arg2[%c0, %c0_0, %c0_1, %c0_2] : memref<1x4x8x16xf32, #tpu.memory_space<vmem>>, vector<1x1x8x16xf32>
    %1 = vector.shape_cast %0 : vector<1x1x8x16xf32> to vector<8x16xf32>
    %c0_3 = arith.constant 0 : index
    %c1 = arith.constant 1 : index
    %c0_4 = arith.constant 0 : index
    %c0_5 = arith.constant 0 : index
    %2 = vector.load %arg2[%c0_3, %c1, %c0_4, %c0_5] : memref<1x4x8x16xf32, #tpu.memory_space<vmem>>, vector<1x1x8x16xf32>
    %3 = vector.shape_cast %2 : vector<1x1x8x16xf32> to vector<8x16xf32>
    %c0_6 = arith.constant 0 : index
    %c2 = arith.constant 2 : index
    %c0_7 = arith.constant 0 : index
    %c0_8 = arith.constant 0 : index
    %4 = vector.load %arg2[%c0_6, %c2, %c0_7, %c0_8] : memref<1x4x8x16xf32, #tpu.memory_space<vmem>>, vector<1x1x8x16xf32>
    %5 = vector.shape_cast %4 : vector<1x1x8x16xf32> to vector<8x16xf32>
    %c0_9 = arith.constant 0 : index
    %c3 = arith.constant 3 : index
    %c0_10 = arith.constant 0 : index
    %c0_11 = arith.constant 0 : index
    %6 = vector.load %arg2[%c0_9, %c3, %c0_10, %c0_11] : memref<1x4x8x16xf32, #tpu.memory_space<vmem>>, vector<1x1x8x16xf32>
    %7 = vector.shape_cast %6 : vector<1x1x8x16xf32> to vector<8x16xf32>
    %8 = arith.addf %1, %3 : vector<8x16xf32>
    %cst = arith.constant 5.000000e-01 : f32
    %9 = vector.broadcast %cst : f32 to vector<8x16xf32>
    %10 = arith.mulf %8, %9 : vector<8x16xf32>
    %11 = arith.subf %1, %3 : vector<8x16xf32>
    %cst_12 = arith.constant 5.000000e-01 : f32
    %12 = vector.broadcast %cst_12 : f32 to vector<8x16xf32>
    %13 = arith.mulf %11, %12 : vector<8x16xf32>
    %14 = arith.addf %5, %7 : vector<8x16xf32>
    %cst_13 = arith.constant 5.000000e-01 : f32
    %15 = vector.broadcast %cst_13 : f32 to vector<8x16xf32>
    %16 = arith.mulf %14, %15 : vector<8x16xf32>
    %17 = arith.subf %5, %7 : vector<8x16xf32>
    %cst_14 = arith.constant 5.000000e-01 : f32
    %18 = vector.broadcast %cst_14 : f32 to vector<8x16xf32>
    %19 = arith.mulf %17, %18 : vector<8x16xf32>
    %20 = tpu.iota {dimensions = array<i32: 0>} : vector<16x32xi32>
    %c2_i32 = arith.constant 2 : i32
    %21 = vector.broadcast %c2_i32 : i32 to vector<16x32xi32>
    %22 = arith.muli %21, %20 : vector<16x32xi32>
    %23 = tpu.iota {dimensions = array<i32: 1>} : vector<16x32xi32>
    %24 = arith.cmpi eq, %23, %22 : vector<16x32xi32>
    %25 = arith.extui %24 : vector<16x32xi1> to vector<16x32xi32>
    %26 = arith.sitofp %25 : vector<16x32xi32> to vector<16x32xf32>
    %c1_i32 = arith.constant 1 : i32
    %27 = vector.broadcast %c1_i32 : i32 to vector<16x32xi32>
    %28 = arith.addi %22, %27 : vector<16x32xi32>
    %29 = arith.cmpi eq, %23, %28 : vector<16x32xi32>
    %30 = arith.extui %29 : vector<16x32xi1> to vector<16x32xi32>
    %31 = arith.sitofp %30 : vector<16x32xi32> to vector<16x32xf32>
    %32 = arith.addf %26, %31 : vector<16x32xf32>
    %33 = arith.subf %26, %31 : vector<16x32xf32>
    %cst_15 = arith.constant dense<0.000000e+00> : vector<8x32xf32>
    %34 = tpu.matmul %10, %32, %cst_15 {dimension_numbers = #tpu.dot_dimension_numbers<[1], [0], [0], [1], [0, 0, 1, 1], [], []>} : vector<8x16xf32>, vector<16x32xf32>, vector<8x32xf32> -> vector<8x32xf32>
    %cst_16 = arith.constant dense<0.000000e+00> : vector<8x32xf32>
    %35 = tpu.matmul %16, %33, %cst_16 {dimension_numbers = #tpu.dot_dimension_numbers<[1], [0], [0], [1], [0, 0, 1, 1], [], []>} : vector<8x16xf32>, vector<16x32xf32>, vector<8x32xf32> -> vector<8x32xf32>
    %36 = arith.addf %34, %35 : vector<8x32xf32>
    %cst_17 = arith.constant dense<0.000000e+00> : vector<8x32xf32>
    %37 = tpu.matmul %13, %32, %cst_17 {dimension_numbers = #tpu.dot_dimension_numbers<[1], [0], [0], [1], [0, 0, 1, 1], [], []>} : vector<8x16xf32>, vector<16x32xf32>, vector<8x32xf32> -> vector<8x32xf32>
    %cst_18 = arith.constant dense<0.000000e+00> : vector<8x32xf32>
    %38 = tpu.matmul %19, %33, %cst_18 {dimension_numbers = #tpu.dot_dimension_numbers<[1], [0], [0], [1], [0, 0, 1, 1], [], []>} : vector<8x16xf32>, vector<16x32xf32>, vector<8x32xf32> -> vector<8x32xf32>
    %39 = arith.addf %37, %38 : vector<8x32xf32>
    %c0_19 = arith.constant 0 : index
    %c0_20 = arith.constant 0 : index
    %c0_21 = arith.constant 0 : index
    %40 = vector.load %arg3[%c0_19, %c0_20, %c0_21] : memref<1x8x64xf32, #tpu.memory_space<vmem>>, vector<1x8x32xf32>
    %41 = vector.shape_cast %40 : vector<1x8x32xf32> to vector<8x32xf32>
    %42 = vector.shape_cast %36 : vector<8x32xf32> to vector<1x8x32xf32>
    tpu.vector_store %arg3[%c0_19, %c0_20, %c0_21], %42 {strides = array<i32>} : memref<1x8x64xf32, #tpu.memory_space<vmem>>, vector<1x8x32xf32>,
    %c0_22 = arith.constant 0 : index
    %c0_23 = arith.constant 0 : index
    %c32 = arith.constant 32 : index
    %43 = vector.load %arg3[%c0_22, %c0_23, %c32] : memref<1x8x64xf32, #tpu.memory_space<vmem>>, vector<1x8x32xf32>
    %44 = vector.shape_cast %43 : vector<1x8x32xf32> to vector<8x32xf32>
    %45 = vector.shape_cast %39 : vector<8x32xf32> to vector<1x8x32xf32>
    tpu.vector_store %arg3[%c0_22, %c0_23, %c32], %45 {strides = array<i32>} : memref<1x8x64xf32, #tpu.memory_space<vmem>>, vector<1x8x32xf32>,
    return
  }
  func.func @transform_0(%arg0: i32, %arg1: i32) -> (i32, i32, i32, i32) {
    %c0_i32 = arith.constant 0 : i32
    %c0_i32_0 = arith.constant 0 : i32
    %c0_i32_1 = arith.constant 0 : i32
    return %arg0, %c0_i32, %arg1, %c0_i32_0 : i32, i32, i32, i32
  }
  func.func @transform_1(%arg0: i32, %arg1: i32) -> (i32, i32, i32) {
    %c0_i32 = arith.constant 0 : i32
    %c0_i32_0 = arith.constant 0 : i32
    return %arg0, %arg1, %c0_i32 : i32, i32, i32
  }
}

</mosaic_0001>

<bundles_post_ra>
// kernel: tpu_custom_call.1
= control target key start
LH: loop header
LB: loop body
LE: loop exit
PB: predicated region body
PF: predicated region fallthrough
CT: control target
= control target key end

     0   :  { %6 = vsyncpa [#allocation4], 0  ;;  %s1015_s0 = inlined_call_operand.vmem [shape: f32[2,4,32,16], index: 0, kind: input, shape index: {}]   ;;  %s1016_s1 = inlined_call_operand.hbm [shape: f32[2,32,64], index: 1, kind: output, shape index: {}]  }
   0x1   :  { %8 = vsyncpa [#allocation4 + $0x1], 0  ;;  %s865_s6 = smov 0   ;;  %s867_s7 = smov 0  }
   0x2   :  { %s869_s8 = smov 0   ;;  %s871_s9 = smov 0  }
   0x3   :  { %s873_s10 = smov 0   ;;  %s875_s11 = smov 0  }
   0x4   :  { %s877_s12 = smov 0   ;;  %s879_s13 = smov 0  }
   0x5 LB: > { %s617_s14 = sadd.s32 4294967295, %s849_s13   ;;  %s618_s15 = sadd.s32 4294967294, %s849_s13   ;;  %s849_s13 = sphi %s879_s13, %s14_s13   ;;  %s845_s12 = sphi %s877_s12, %s1026_s12   ;;  %s841_s11 = sphi %s875_s11, %s1025_s11   ;;  %s837_s10 = sphi %s873_s10, %s1024_s10   ;;  %s833_s9 = sphi %s871_s9, %s1023_s9   ;;  %s829_s8 = sphi %s869_s8, %s1022_s8   ;;  %s825_s7 = sphi %s867_s7, %s1021_s7   ;;  %s821_s6 = sphi %s865_s6, %s1020_s6  }
   0x6   : > { %s23_s16 = sadd.s32 1, %s841_s11  ;;  %s26_s17 = sadd.s32 1, %s845_s12 }
   0x7   : > { %p24_p0 = scmp.ge.s32.totalorder %s23_s16, 4  ;;  %p42_p1 = scmp.ne.s32.totalorder %s829_s8, %s825_s7 }
   0x8   : > { %p43_p2 = scmp.eq.s32.totalorder %s849_s13, 0  ;;  %p74_p5 = scmp.eq.s32.totalorder %s617_s14, 7 }
   0x9   : > { %s1028_s16 = smov (%p24_p0, %s23_s16), 0  ;;  %s1030_s17 = smov (!%p24_p0, %s26_s17), %s845_s12 }
   0xa   : > { %s31_s18 = ssub.s32 %s841_s11, %s1028_s16  ;;  %p917_p3 = por %p43_p2, %p42_p1 }
   0xb   : > { %p28_p4 = scmp.ge.s32.totalorder %s1030_s17, 2  ;;  %p79_p6 = scmp.ne.s32.totalorder %s825_s7, %s821_s6 }
   0xc   : > { %p80_p7 = scmp.eq.s32.totalorder %s618_s15, 7  ;;  %p925_p8 = por %p74_p5, %p42_p1 }
   0xd   : > { %s1032_s17 = smov (%p28_p4, %s1030_s17), 0  ;;  %s35_s24 = sadd.s32 1, %s829_s8 }
   0xe   : > { %p929_p9 = por %p80_p7, %p79_p6  ;;  %s30_s22 = ssub.s32 %s845_s12, %s1032_s17 }
   0xf   : > { %s32_s23 = sor.u32 %s31_s18, %s30_s22  ;;  %p620_p11 = scmp.ge.s32.totalorder %s849_s13, 8 }
  0x10   : > { %p33_p10 = scmp.eq.s32.totalorder %s32_s23, 0 }
  0x11   : > { %96 = sbr.rel (%p620_p11) target bundleno = 32 (0x20), region = 16 }
  0x12   : > { %s937_s25 = scalar_select %p33_p10, %s829_s8, %s35_s24  }
  0x16   : > { %99 = sbr.rel (!%p917_p3) target bundleno = 32 (0x20), region = 20  ;;  %s101_s26 = sand.u32 (%p917_p3), 1, %s829_s8  }
  0x17   : > { %s622_s27 = sshll.u32 (%p917_p3), %s845_s12, 4  ;;  %s621_s28 = sshll.u32 (%p917_p3), %s101_s26, 5 }
  0x18   : > { %s105_s29 = sadd.s32 (%p917_p3), %s841_s11, %s622_s27  ;;  %s103_s5 = scalar_lea.vmem (%p917_p3), [#allocation2], %s621_s28 }
  0x19   : > { %s623_s30 = sshll.u32 (%p917_p3), %s105_s29, 3 }
  0x1a   : > { %s107_s4 = scalar_lea.vmem (%p917_p3), %s1015_s0, %s623_s30 }
  0x1b   : > { %v142_v0 = vld [vmem:[%s107_s4] sm:$0xff] }
  0x1c   : > { %v144_v1 = vld [vmem:[%s107_s4 + $0x20] sm:$0xff]  ;;  %143 = vst [vmem:[%s103_s5] sm:$0xff] %v142_v0 }
  0x1d   : > { %v146_v2 = vld [vmem:[%s107_s4 + $0x40] sm:$0xff]  ;;  %145 = vst [vmem:[%s103_s5 + $0x8] sm:$0xff] %v144_v1 }
  0x1e   : > { %147 = vst [vmem:[%s103_s5 + $0x10] sm:$0xff] %v146_v2  ;;  %v148_v3 = vld [vmem:[%s107_s4 + $0x60] sm:$0xff] }
  0x1f   : > { %149 = vst [vmem:[%s103_s5 + $0x18] sm:$0xff] %v148_v3 }
  0x20 PF: > { %p624_p12 = scmp.ge.s32.totalorder %s849_s13, 1  ;;  %p154_p13 = scmp.lt.s32.totalorder %s849_s13, 9 }
  0x22   : > { %p155_p0 = pnand %p624_p12, %p154_p13 }
  0x23   : > { %s951_s14 = sand.u32 (!%p155_p0), 1, %s825_s7   ;;  %s853_s23 = smov (!%p155_p0), 32  }
  0x24   : > { %158 = sbr.rel (%p155_p0) target bundleno = 387 (0x183), region = 58  ;;  %s625_s15 = sshll.u32 (!%p155_p0), %s951_s14, 5 }
  0x25   : > { %s163_s18 = scalar_lea.vmem (!%p155_p0), [#allocation2], %s625_s15  ;;  %s626_s19 = sshll.u32 (!%p155_p0), %s951_s14, 3 }
  0x26   : > { %s179_s22 = scalar_lea.vmem (!%p155_p0), [#allocation3], %s626_s19  ;;  %s639_s24 = sshll.u32 (!%p155_p0), %s837_s10, 2 }
  0x27   : > { %s533_s26 = sadd.s32 (!%p155_p0), %s833_s9, %s639_s24  ;;  %s537_s28 = sshll.u32 (!%p155_p0), %s179_s22, 4  ;;  %s538_s28 = int_to_ptr.vmem [resolvable:$true] %s537_s28 }
  0x28   : > { %s640_s27 = sshll.u32 (!%p155_p0), %s533_s26, 7  ;;  %s522_s3 = scalar_lea.sflag (!%p155_p0), [#allocation4], %s951_s14 }
  0x29   : > { %v195_v4 = vlaneseq  ;;  %v851_v5 = vmov 0.0   ;;  %vm852_vm0 = vmmov 0   ;;  %v628_v10 = vld [vmem:[%s163_s18 + $0x10] sm:$0xff]  ;;  %v629_v11 = vld [vmem:[%s163_s18 + $0x18] sm:$0xff]  ;;  %v180_v14 = vld [vmem:[%s163_s18] sm:$0xff]  ;;  %vm220_vm5 = vcmask 130048   ;;  %s968_s2 = scalar_lea.hbm %s1016_s1, %s640_s27 }
  0x2a   : > { %655 = vmatprep.subr.mxu0 %v851_v5  ;;  %662 = vmatprep.subr.mxu1 %v851_v5  ;;  %v627_v15 = vld [vmem:[%s163_s18 + $0x8] sm:$0xff]  ;;  %v191_v17 = vadd.f32 %v629_v11, %v628_v10  ;;  %v193_v29 = vsub.f32 %v628_v10, %v629_v11  ;;  %vm513_vm6 = vcmask 261120   ;;  %vm519_vm7 = vcmask 523520   ;;  %s757_s4 = scalar_lea.vmem %s538_s28, 128  ;;  %s854_s5 = smov [#allocation3]  }
  0x2b   : > { %v196_v6 = vshrl.u32 %v195_v4, 7  ;;  %659 = vmatprep.mubr.msk.f32.mxu0 %vm852_vm0, %v851_v5  ;;  %666 = vmatprep.mubr.msk.f32.mxu1 %vm852_vm0, %v851_v5  ;;  %v201_v8 = vand.u32 127, %v195_v4  ;;  %v187_v21 = vadd.f32 %v627_v15, %v180_v14  ;;  %v189_v30 = vsub.f32 %v180_v14, %v627_v15  ;;  %p758_p1 = scmp.ne.s32.totalorder %s538_s28, %s757_s4  ;;  %s761_s10 = sshll.u32 %s854_s5, 4  ;;  %s762_s10 = int_to_ptr.vmem [resolvable:$false] %s761_s10 }
  0x2c   : > { %v192_v27 = vmul.f32 0.5, %v191_v17  ;;  %v194_v31 = vmul.f32 0.5, %v193_v29  ;;  %s763_s9 = scalar_lea.vmem %s762_s10, 256  ;;  %p764_p4 = scmp.lt.s32.totalorder %s538_s28, %s762_s10 }
  0x2d   : > { %v197_v7 = vadd.s32 8, %v196_v6  ;;  %v198_v9 = vmul.u32 2, %v196_v6  ;;  %v188_v28 = vmul.f32 0.5, %v187_v21  ;;  %v190_v32 = vmul.f32 0.5, %v189_v30  ;;  %p759_p2 = pnand %p758_p1, %p925_p8  ;;  %p765_p5 = scmp.lt.s32.totalorder %s763_s9, %s757_s4 }
  0x2f   : > { %v199_v12 = vmul.u32 2, %v197_v7  ;;  %vm202_vm1 = vcmp.eq.s32.totalorder %v201_v8, %v198_v9  ;;  %v208_v13 = vadd.s32 1, %v198_v9  ;;  %p760_p3 = pneg %p759_p2  ;;  %p766_p6 = por %p765_p5, %p764_p4 }
  0x30   : > { %v630_v19 = vsel %vm202_vm1, 1.0, %v851_v5 }
  0x31   : > { %vm203_vm2 = vcmp.eq.s32.totalorder %v201_v8, %v199_v12  ;;  %v209_v16 = vadd.s32 1, %v199_v12  ;;  %vm210_vm3 = vcmp.eq.s32.totalorder %v201_v8, %v208_v13  ;;  %p767_p7 = pnand %p766_p6, %p760_p3 }
  0x32   : > { %v631_v18 = vsel %vm203_vm2, 1.0, %v851_v5  ;;  %v632_v20 = vsel %vm210_vm3, 1.0, %v851_v5 }
  0x33   : > { %vm211_vm4 = vcmp.eq.s32.totalorder %v201_v8, %v209_v16  ;;  %v218_v25 = vsub.f32 %v630_v19, %v632_v20  ;;  %v216_v26 = vadd.f32 %v632_v20, %v630_v19 }
  0x34   : > { %v633_v22 = vsel %vm211_vm4, 1.0, %v851_v5 }
  0x35   : > { %v219_v23 = vsub.f32 %v631_v18, %v633_v22  ;;  %v217_v24 = vadd.f32 %v633_v22, %v631_v18 }
  0x37   : > { %656 = vmatpush3.msra.mxu0 %v219_v23  ;;  %663 = vmatpush3.msra.mxu1 %v217_v24 }
  0x38   : > { %657 = vmatprep.subr.mxu0 %v851_v5  ;;  %664 = vmatprep.subr.mxu1 %v851_v5 }
  0x39   : > { %658 = vmatpush3.msra.mxu0 %v218_v25  ;;  %665 = vmatpush3.msra.mxu1 %v216_v26 }
  0x3a   : > { %660 = vmatmul.mubr.msk.f32.vlgmr.msra.gmra.mxu0 %vm220_vm5, %v192_v27  ;;  %667 = vmatmul.mubr.msk.f32.vlgmr.msra.gmra.mxu1 %vm220_vm5, %v188_v28 }
  0x3b   : > { %669 = vmatprep.subr.mxu0 %v851_v5  ;;  %676 = vmatprep.subr.mxu1 %v851_v5 }
  0x3c   : > { %670 = vmatpush3.msra.mxu0 %v219_v23  ;;  %677 = vmatpush3.msra.mxu1 %v217_v24 }
  0x3d   : > { %671 = vmatprep.subr.mxu0 %v851_v5  ;;  %678 = vmatprep.subr.mxu1 %v851_v5 }
  0x3e   : > { %672 = vmatpush3.msra.mxu0 %v218_v25  ;;  %673 = vmatprep.mubr.msk.f32.mxu0 %vm852_vm0, %v851_v5 }
  0x3f   : > { %679 = vmatpush3.msra.mxu1 %v216_v26  ;;  %680 = vmatprep.mubr.msk.f32.mxu1 %vm852_vm0, %v851_v5 }
  0x40   : > { %674 = vmatmul.mubr.msk.f32.vlgmr.msra.gmra.mxu0 %vm220_vm5, %v194_v31  ;;  %681 = vmatmul.mubr.msk.f32.vlgmr.msra.gmra.mxu1 %vm220_vm5, %v190_v32 }
  0xfa   : > { %v290_v33 = vpop.f32.mrf.mxu0  ;;  %v363_v34 = vpop.f32.mrf.mxu1 }
  0xfb   : > { %v364_v35 = vadd.f32 %v363_v34, %v290_v33 }
  0xfc   : > { %v661_v36 = vpop.f32.mrf.mxu0  ;;  %v668_v37 = vpop.f32.mrf.mxu1 }
  0xfd   : > { %514 = vst.msk [vmem:[%s179_s22] sm:$0xff] %vm513_vm6, %v364_v35 }
 0x100   : > { %v436_v38 = vpop.f32.mrf.mxu0  ;;  %v509_v39 = vpop.f32.mrf.mxu1 }
 0x101   : > { %v510_v40 = vadd.f32 %v509_v39, %v436_v38 }
 0x102   : > { %v675_v41 = vpop.f32.mrf.mxu0  ;;  %v682_v42 = vpop.f32.mrf.mxu1 }
 0x103   : > { %516 = vrot.lane.b32.xlu0 %v510_v40, %s853_s23 }
 0x175   : > { %v517_v43 = vpop.permute.xlu0 %516 }
 0x176   : > { %520 = vst.msk [vmem:[%s179_s22] sm:$0xff] %vm519_vm7, %v517_v43 }
 0x177   : > { %770 = shalt.err (!%p767_p7)
}
 0x178   : > { %s771_s15 = scalar_lea.hbm %s968_s2, 128  ;;  %s775_s19 = scalar_lea.hbm %s1016_s1, 1024 }
 0x179   : > { %p772_p10 = scmp.ne.s32.totalorder %s968_s2, %s771_s15  ;;  %p776_p13 = scmp.lt.s32.totalorder %s968_s2, %s1016_s1 }
 0x17a   : > { %p777_p0 = scmp.lt.s32.totalorder %s775_s19, %s771_s15 }
 0x17b   : > { %p773_p11 = pnand %p772_p10, %p925_p8 }
 0x17c   : > { %p778_p1 = por %p777_p0, %p776_p13 }
 0x17d   : > { %p774_p12 = pneg %p773_p11 }
 0x17f   : > { %p779_p2 = pnand %p778_p1, %p774_p12 }
 0x181   : > { %782 = shalt.err (!%p779_p2)
}
 0x182   : > { %683 = dma.vmem_to_hbm [thread:$0]  (%p925_p8), %s538_s28, 128, %s968_s2, %s522_s3  }
 0x183 PF: > { %p689_p3 = scmp.ge.s32.totalorder %s849_s13, 2  ;;  %s549_s24 = sand.u32 1, %s821_s6  }
 0x184   : > { %s550_s26 = scalar_lea.sflag [#allocation4], %s549_s24 }
 0x185   : > { %p686_p4 = pnand %p689_p3, %p929_p9 }
 0x187   : > { %p687_p5 = pneg %p686_p4 }
 0x189   : > { %816 = dma.done.wait (%p687_p5), %s550_s26, 128  }
 0x18a   : > { %818 = vsyncadd (%p687_p5), %s550_s26, 4294967168  ;;  %s14_s13 = sadd.s32 1, %s849_s13   ;;  %s1020_s6 = smov %s825_s7 }
 0x18b   : > { %p11_p6 = scmp.ge.s32.totalorder %s14_s13, 10   ;;  %s1021_s7 = smov %s829_s8 }
 0x18c   : > { %s1022_s8 = smov %s937_s25  ;;  %s1023_s9 = smov %s841_s11 }
 0x18d   : > { %s1024_s10 = smov %s845_s12  ;;  %s1025_s11 = smov %s1028_s16 }
 0x18e   : > { %s1026_s12 = smov %s1032_s17  ;;  %13 = sbr.rel (!%p11_p6) target bundleno = 5 (0x5), region = 105 }
 0x193   :  { %555 = vsyncpa [#allocation4], 1 }
 0x194   :  { %557 = vsyncpa [#allocation4 + $0x1], 1 }

</bundles_post_ra>
